<compile_context>
chip_gen: v6e
topology: v6e:2x2x1
jax: 0.10.0
libtpu: 0.0.40
codegen_flags: <defaults>
</compile_context>

<pallas_src>
import math

import jax
import jax.numpy as jnp
from jax.experimental import pallas as pl
from jax.experimental.pallas import tpu as pltpu

_SQRT2 = math.sqrt(2.0)


def _fourier_kernel(x_ref, omega_ref, rot_ref, o_ref):
    # (tb, in_dim) @ (in_dim, tn) with f32-exact arguments (HIGHEST precision);
    # the MXU has enormous slack at K = in_dim, so the extra passes are free.
    feats = jnp.dot(
        x_ref[...],
        omega_ref[...],
        preferred_element_type=jnp.float32,
        precision=jax.lax.Precision.HIGHEST,
    )
    feats = feats + rot_ref[...]          # (tb, tn) + (1, tn) broadcast, VPU slack
    o_ref[...] = (jnp.cos(feats) * _SQRT2).astype(o_ref.dtype)   # cos on the EUP


def _round_up(x, m):
    return (x + m - 1) // m * m


def _best_tile(total, unit, cap):
    """Largest divisor of `total` that is a multiple of `unit` and <= cap."""
    best = unit
    d = unit
    limit = min(total, cap)
    while d <= limit:
        if total % d == 0:
            best = d
        d += unit
    return best


def fourier_features(x, omega, rotation, *, tb=None, tn=None, out_dtype=None,
                     out_tile_bytes=4 * 1024 * 1024,
                     vmem_limit_bytes=32 * 1024 * 1024):
    """FourierFeatures forward.

    x: [B, in_dim] f32, omega: [in_dim, n_fourier] f32, rotation: [n_fourier] f32.
    out_dtype: defaults to x.dtype (f32, matches the PyTorch module). Pass
      jnp.bfloat16 when bandwidth-bound — the cos argument stays f32, only the
      stored output is narrowed (~0.4% relative error on values in [-sqrt2, sqrt2]).
    """
    B, in_dim = x.shape
    in_dim_w, n_fourier = omega.shape
    assert in_dim == in_dim_w, "x / omega inner dims must match"
    if out_dtype is None:
        out_dtype = x.dtype
    out_itemsize = jnp.dtype(out_dtype).itemsize

    # ---- minimal alignment padding: <8 extra rows, <128 extra columns --------
    Bp = _round_up(max(B, 8), 8)
    Np = _round_up(max(n_fourier, 128), 128)

    # ---- tile selection ------------------------------------------------------
    if tb is None:
        # Largest multiple-of-8 divisor of Bp, capped at 512 rows.
        tb = _best_tile(Bp, 8, 512)
    else:
        tb = _round_up(tb, 8)
        Bp = _round_up(Bp, tb)
    if tn is None:
        # Lane-dense (multiple of 128) divisor of Np sized from a VMEM byte
        # budget for the output tile (~4 MiB: double-buffered ~8 MiB, safe on
        # v7x's 64 MiB VMEM and well under the 32 MiB scoped limit everywhere).
        tn_cap = max(128, (out_tile_bytes // max(tb * out_itemsize, 1)) // 128 * 128)
        tn = _best_tile(Np, 128, tn_cap)
    else:
        tn = _round_up(tn, 128)
        Np = _round_up(Np, tn)

    # ---- guarantee >= 2 parallel grid steps (v7x has 2 TensorCores) ----------
    if (Bp // tb) * (Np // tn) < 2:
        if Bp > 8 and tb == Bp:
            tb = _best_tile(Bp, 8, max(8, Bp // 2))
        elif Np > 128 and tn == Np:
            tn = _best_tile(Np, 128, max(128, Np // 2))

    # ---- wrapper-side zero padding (sliced off at the end) -------------------
    x_p = x if Bp == B else jnp.pad(x, ((0, Bp - B), (0, 0)))
    if Np == n_fourier:
        omega_p = omega
        rot_p = rotation.reshape(1, n_fourier)
    else:
        omega_p = jnp.pad(omega, ((0, 0), (0, Np - n_fourier)))
        rot_p = jnp.pad(rotation, (0, Np - n_fourier)).reshape(1, Np)

    grid = (Bp // tb, Np // tn)

    cost = pl.CostEstimate(
        flops=2 * Bp * in_dim * Np,
        transcendentals=Bp * Np,
        bytes_accessed=4 * (Bp * in_dim + in_dim * Np + Np) + Bp * Np * out_itemsize,
    )

    out = pl.pallas_call(
        _fourier_kernel,
        out_shape=jax.ShapeDtypeStruct((Bp, Np), out_dtype),
        grid_spec=pltpu.PrefetchScalarGridSpec(
            num_scalar_prefetch=0,
            grid=grid,
            in_specs=[
                # x tile: (tb, in_dim); in_dim equals the full array dim.
                pl.BlockSpec((tb, in_dim), lambda i, j: (i, 0)),
                # omega tile: full K, tn columns of the current N block.
                pl.BlockSpec((in_dim, tn), lambda i, j: (0, j)),
                # rotation row for the current N block.
                pl.BlockSpec((1, tn), lambda i, j: (0, j)),
            ],
            out_specs=pl.BlockSpec((tb, tn), lambda i, j: (i, j)),
        ),
        compiler_params=pltpu.CompilerParams(
            dimension_semantics=("parallel", "parallel"),
            vmem_limit_bytes=vmem_limit_bytes,
        ),
        cost_estimate=cost,
    )(x_p, omega_p, rot_p)

    if Bp != B or Np != n_fourier:
        out = out[:B, :n_fourier]
    return out


if __name__ == "__main__":
    # Deterministic parameter init (mirrors __init__: randn * omega_std, rand * 2*pi).
    in_dim = 4
    n_fourier = 200   # not a multiple of 128 -> exercises N padding path
    batch = 100       # not a multiple of 8   -> exercises batch padding path
    omega_std = 2.0 * math.pi

    key = jax.random.PRNGKey(0)
    k_omega, k_rot, k_x = jax.random.split(key, 3)

    omega = jax.random.normal(k_omega, (in_dim, n_fourier), dtype=jnp.float32) * omega_std
    rotation = jax.random.uniform(k_rot, (n_fourier,), dtype=jnp.float32) * (2.0 * math.pi)
    x = jax.random.normal(k_x, (batch, in_dim), dtype=jnp.float32)

    def ref_fn(xv):
        # Reference matmul also at HIGHEST precision: with default MXU precision
        # the bf16-rounded operands shift the (large-magnitude) cos argument.
        feats = jnp.dot(xv, omega, precision=jax.lax.Precision.HIGHEST) + rotation[None, :]
        return jnp.cos(feats) * _SQRT2

    out = jax.block_until_ready(fourier_features(x, omega, rotation))
    assert out.shape == (batch, n_fourier)
    assert jnp.allclose(out, ref_fn(x), atol=2e-4, rtol=2e-4), "mismatch vs reference"

    # Nicely divisible shape with a bigger batch (previously failing case).
    x2 = jax.random.normal(jax.random.PRNGKey(1), (1024, in_dim), dtype=jnp.float32)
    out2 = jax.block_until_ready(fourier_features(x2, omega, rotation))
    assert jnp.allclose(out2, ref_fn(x2), atol=2e-4, rtol=2e-4), \
        "mismatch vs reference (big batch)"

    # bf16 output path (recommended when bandwidth-bound); argument stays f32.
    out3 = jax.block_until_ready(
        fourier_features(x2, omega, rotation, out_dtype=jnp.bfloat16))
    assert jnp.allclose(out3.astype(jnp.float32), ref_fn(x2), atol=1.5e-2, rtol=1.5e-2), \
        "mismatch vs reference (bf16 output)"

    print("KERNEL_OK")
</pallas_src>

<mosaic_0001>
module attributes {stable_mosaic.version = 11 : i64} {
  func.func @_fourier_kernel(%arg0: i32, %arg1: i32, %arg2: memref<8x4xf32, #tpu.memory_space<vmem>>, %arg3: memref<4x256xf32, #tpu.memory_space<vmem>>, %arg4: memref<1x256xf32, #tpu.memory_space<vmem>>, %arg5: memref<8x256xf32, #tpu.memory_space<vmem>>) attributes {dimension_semantics = [#tpu.dimension_semantics<parallel>, #tpu.dimension_semantics<parallel>], iteration_bounds = array<i64: 13, 1>, scalar_prefetch = 0 : i64, scratch_operands = 0 : i64, tpu.core_type = #tpu.core_type<tc>, window_params = [{transform_indices = @transform_0, window_bounds = array<i64: 8, 4>}, {transform_indices = @transform_1, window_bounds = array<i64: 4, 256>}, {transform_indices = @transform_2, window_bounds = array<i64: 1, 256>}, {transform_indices = @transform_3, window_bounds = array<i64: 8, 256>}]} {
    %c0 = arith.constant 0 : index
    %c0_0 = arith.constant 0 : index
    %0 = vector.load %arg2[%c0, %c0_0] : memref<8x4xf32, #tpu.memory_space<vmem>>, vector<8x4xf32>
    %c0_1 = arith.constant 0 : index
    %c0_2 = arith.constant 0 : index
    %1 = vector.load %arg3[%c0_1, %c0_2] : memref<4x256xf32, #tpu.memory_space<vmem>>, vector<4x256xf32>
    %cst = arith.constant dense<0.000000e+00> : vector<8x256xf32>
    %2 = tpu.matmul %0, %1, %cst {dimension_numbers = #tpu.dot_dimension_numbers<[1], [0], [0], [1], [0, 0, 1, 1], [], []>, precision = #tpu.contract_precision<fp32>} : vector<8x4xf32>, vector<4x256xf32>, vector<8x256xf32> -> vector<8x256xf32>
    %c0_3 = arith.constant 0 : index
    %c0_4 = arith.constant 0 : index
    %3 = vector.load %arg4[%c0_3, %c0_4] : memref<1x256xf32, #tpu.memory_space<vmem>>, vector<1x256xf32>
    %4 = vector.broadcast %3 : vector<1x256xf32> to vector<8x256xf32>
    %5 = arith.addf %2, %4 : vector<8x256xf32>
    %6 = math.cos %5 : vector<8x256xf32>
    %cst_5 = arith.constant 1.41421354 : f32
    %7 = vector.broadcast %cst_5 : f32 to vector<8x256xf32>
    %8 = arith.mulf %6, %7 : vector<8x256xf32>
    %c0_6 = arith.constant 0 : index
    %c0_7 = arith.constant 0 : index
    %9 = vector.load %arg5[%c0_6, %c0_7] : memref<8x256xf32, #tpu.memory_space<vmem>>, vector<8x256xf32>
    tpu.vector_store %arg5[%c0_6, %c0_7], %8 {strides = array<i32>} : memref<8x256xf32, #tpu.memory_space<vmem>>, vector<8x256xf32>,
    return
  }
  func.func @transform_0(%arg0: i32, %arg1: i32) -> (i32, i32) {
    %c0_i32 = arith.constant 0 : i32
    %c0_i32_0 = arith.constant 0 : i32
    return %arg0, %c0_i32 : i32, i32
  }
  func.func @transform_1(%arg0: i32, %arg1: i32) -> (i32, i32) {
    %c0_i32 = arith.constant 0 : i32
    %c0_i32_0 = arith.constant 0 : i32
    return %c0_i32, %arg1 : i32, i32
  }
  func.func @transform_2(%arg0: i32, %arg1: i32) -> (i32, i32) {
    %c0_i32 = arith.constant 0 : i32
    %c0_i32_0 = arith.constant 0 : i32
    return %c0_i32, %arg1 : i32, i32
  }
  func.func @transform_3(%arg0: i32, %arg1: i32) -> (i32, i32) {
    %c0_i32 = arith.constant 0 : i32
    return %arg0, %arg1 : i32, i32
  }
}

</mosaic_0001>

<bundles_post_ra>
// kernel: tpu_custom_call.1
= control target key start
LH: loop header
LB: loop body
LE: loop exit
PB: predicated region body
PF: predicated region fallthrough
CT: control target
= control target key end

     0   :  { %8 = vsyncpa [#allocation3], 0  ;;  %s1430_s0 = inlined_call_operand.vmem [shape: f32[104,4], index: 0, kind: input, shape index: {}]   ;;  %s1431_s1 = inlined_call_operand.vmem [shape: f32[4,256], index: 1, kind: input, shape index: {}]   ;;  %s1432_s2 = inlined_call_operand.vmem [shape: f32[1,256], index: 2, kind: input, shape index: {}]   ;;  %s1433_s3 = inlined_call_operand.hbm [shape: f32[104,256], index: 3, kind: output, shape index: {}]  }
   0x1   :  { %10 = vsyncpa [#allocation3 + $0x1], 0  ;;  %s1244_s12 = smov 0   ;;  %s1246_s13 = smov 0  }
   0x2   :  { %s1248_s14 = smov 0   ;;  %s1250_s15 = smov 0  }
   0x3   :  { %s1252_s16 = smov 0   ;;  %s1254_s17 = smov 0  }
   0x4 LB: > { %s1036_s18 = sadd.s32 4294967295, %s1214_s17   ;;  %s1037_s19 = sadd.s32 4294967294, %s1214_s17   ;;  %s1214_s17 = sphi %s1254_s17, %s16_s17   ;;  %s1210_s16 = sphi %s1252_s16, %s1444_s16   ;;  %s1206_s15 = sphi %s1250_s15, %s1443_s15   ;;  %s1202_s14 = sphi %s1248_s14, %s1442_s14   ;;  %s1198_s13 = sphi %s1246_s13, %s1441_s13   ;;  %s1194_s12 = sphi %s1244_s12, %s1440_s12  }
   0x5   : > { %s28_s20 = sadd.s32 1, %s1210_s16  ;;  %s115_s21 = sadd.s32 1, %s1202_s14 }
   0x6   : > { %p30_p0 = scmp.ge.s32.totalorder %s28_s20, 13  ;;  %p125_p1 = scmp.ne.s32.totalorder %s1202_s14, %s1198_s13 }
   0x7   : > { %p126_p2 = scmp.eq.s32.totalorder %s1036_s18, 12  ;;  %p131_p3 = scmp.ne.s32.totalorder %s1198_s13, %s1194_s12 }
   0x8   : > { %s1446_s20 = smov (%p30_p0, %s28_s20), 0  ;;  %p132_p5 = scmp.eq.s32.totalorder %s1037_s19, 12 }
   0x9   : > { %p1284_p4 = por %p126_p2, %p125_p1  ;;  %s110_s23 = ssub.s32 %s1210_s16, %s1446_s20 }
   0xa   : > { %p1042_p6 = scmp.ge.s32.totalorder %s1214_s17, 1  ;;  %p113_p7 = scmp.eq.s32.totalorder %s110_s23, 0 }
   0xb   : > { %p1291_p8 = por %p132_p5, %p131_p3  ;;  %p174_p9 = scmp.lt.s32.totalorder %s1214_s17, 14 }
   0xc   : > { %s1297_s25 = scalar_select %p113_p7, %s1202_s14, %s115_s21  }
   0xd   : > { %p175_p10 = pnand %p1042_p6, %p174_p9 }
   0xe   : > { %p206_p11 = scmp.lt.s32.totalorder (!%p175_p10), %s1206_s15, 12  ;;  %s203_s8 = sand.u32 (!%p175_p10), 1, %s1198_s13  }
   0xf   : > { %178 = sbr.rel (%p175_p10) target bundleno = 350 (0x15e), region = 32  ;;  %s1043_s9 = sshll.u32 (!%p175_p10), %s203_s8, 4 }
  0x10   : > { %s205_s10 = scalar_lea.vmem (!%p175_p10), [#allocation2], %s1043_s9  ;;  %s1058_s11 = sshll.u32 (!%p175_p10), %s1206_s15, 8 }
  0x11   : > { %s939_s18 = sshll.u32 (!%p175_p10), %s205_s10, 4  ;;  %s937_s23 = scalar_lea.hbm (!%p175_p10), %s1433_s3, %s1058_s11  ;;  %s940_s18 = int_to_ptr.vmem [resolvable:$true] %s939_s18 }
  0x12   : > { %s923_s26 = scalar_lea.sflag (!%p175_p10), [#allocation3], %s203_s8  ;;  %s1138_s27 = scalar_lea.vmem (!%p175_p10), %s940_s18, 256 }
  0x13   : > { %p1139_p12 = scmp.ne.s32.totalorder (!%p175_p10), %s940_s18, %s1138_s27 }
  0x14   : > { %v223_v0 = vld [vmem:[%s1431_s1] sm:$0xff]  ;;  %vm242_vm0 = vcmask 1043456   ;;  %v1216_v3 = vmov 0.0   ;;  %s207_s28 = scalar_select %p206_p11, %s1206_s15, 12  ;;  %vm238_vm1 = vcmask 31744   ;;  %v226_v22 = vlaneseq }
  0x15   : > { %v237_v1 = vcombine.high %v223_v0, %v223_v0  ;;  %v243_v2 = vsel %vm242_vm0, %v223_v0, 0  ;;  %313 = vmatprep.mubr.f32.mxu0 %v1216_v3  ;;  %399 = vmatprep.mubr.f32.mxu1 %v1216_v3  ;;  %v224_v25 = vld [vmem:[%s1432_s2] sm:$0x3]  ;;  %p1140_p13 = pnand %p1139_p12, %p1284_p4  ;;  %s1223_s15 = smov [#allocation2]  }
  0x16   : > { %v279_v4 = vand.u32 4294901760, %v243_v2  ;;  %s1044_s29 = sshll.u32 %s207_s28, 3  ;;  %v227_v23 = vshrl.u32 %v226_v22, 7  ;;  %s1142_s28 = sshll.u32 %s1223_s15, 4  ;;  %s1143_s28 = int_to_ptr.vmem [resolvable:$false] %s1142_s28 }
  0x17   : > { %v245_v5 = vsel %vm242_vm0, %v237_v1, 0  ;;  %s209_s5 = scalar_lea.vmem %s1430_s0, %s1044_s29  ;;  %p1141_p0 = pneg %p1140_p13 }
  0x18   : > { %v277_v6 = vand.u32 4294901760, %v245_v5  ;;  %v362_v7 = vsub.f32 %v243_v2, %v279_v4  ;;  %v222_v10 = vld [vmem:[%s209_s5] sm:$0xff]  ;;  %v228_v24 = vsub.s32 0, %v227_v23  ;;  %v232_v26 = vsub.s32 1, %v227_v23  ;;  %s1144_s29 = scalar_lea.vmem %s1143_s28, 512  ;;  %p1145_p1 = scmp.lt.s32.totalorder %s940_s18, %s1143_s28 }
  0x19   : > { %v240_v11 = vsel %vm238_vm1, %v222_v10, 0  ;;  %v1218_v10 = vmov 2475754826   ;;  %v1222_v23 = vmov 1326507024   ;;  %p1146_p2 = scmp.lt.s32.totalorder %s1144_s29, %s1138_s27 }
  0x1a   : > { %278 = vmatprep.subr.mxu0 %v277_v6  ;;  %v356_v8 = vsub.f32 %v245_v5, %v277_v6  ;;  %v363_v9 = vand.u32 4294901760, %v362_v7  ;;  %v314_v14 = vand.u32 4294901760, %v240_v11  ;;  %v229_v27 = vrot.slane %v224_v25, %v228_v24 }
  0x1b   : > { %280 = vmatpush1.msra.mxu0 %v279_v4  ;;  %v233_v29 = vrot.slane %v224_v25, %v232_v26  ;;  %p1147_p3 = por %p1146_p2, %p1145_p1 }
  0x1c   : > { %v357_v12 = vand.u32 4294901760, %v356_v8  ;;  %v364_v13 = vsub.f32 %v362_v7, %v363_v9  ;;  %439 = vmatprep.subr.mxu0 %v356_v8  ;;  %v315_v16 = vsub.f32 %v240_v11, %v314_v14 }
  0x1d   : > { %p1148_p5 = pnand %p1147_p3, %p1141_p0 }
  0x1e   : > { %v358_v15 = vsub.f32 %v356_v8, %v357_v12  ;;  %v365_v17 = vand.u32 4294901760, %v364_v13  ;;  %v316_v19 = vand.u32 4294901760, %v315_v16 }
  0x20   : > { %v359_v18 = vand.u32 4294901760, %v358_v15  ;;  %v317_v20 = vsub.f32 %v315_v16, %v316_v19 }
  0x22   : > { %360 = vmatprep.subr.mxu1 %v359_v18  ;;  %v318_v21 = vand.u32 4294901760, %v317_v20 }
  0x23   : > { %366 = vmatpush1.msra.mxu1 %v365_v17 }
  0x24   : > { %401 = vmatmul.mubr.f32.vlgmr.msra.gmra.mxu1 %v314_v14  ;;  %515 = vmatprep.subr.mxu1 %v277_v6 }
  0x25   : > { %517 = vmatpush1.msra.mxu1 %v279_v4  ;;  %550 = vmatprep.mubr.f32.mxu1 %v1216_v3 }
  0x26   : > { %319 = vmatmul.mubr.f32.vlgmr.msra.gmra.mxu0 %v318_v21  ;;  %669 = vmatprep.subr.mxu1 %v277_v6 }
  0x27   : > { %442 = vmatpush1.msra.mxu0 %v362_v7  ;;  %475 = vmatprep.mubr.f32.mxu0 %v1216_v3  ;;  %v1217_v7 = vmov 683565275  }
  0x28   : > { %593 = vmatprep.subr.mxu0 %v357_v12  ;;  %554 = vmatmul.mubr.f32.vlgmr.msra.gmra.mxu1 %v316_v19  ;;  %v1219_v12 = vmov 2131351028  }
  0x29   : > { %671 = vmatpush1.msra.mxu1 %v279_v4  ;;  %704 = vmatprep.mubr.f32.mxu1 %v1216_v3 }
  0x2a   : > { %478 = vmatmul.mubr.f32.vlgmr.msra.gmra.mxu0 %v315_v16  ;;  %v1221_v16 = vmov 920167782  }
  0x2b   : > { %597 = vmatpush1.msra.mxu0 %v363_v9  ;;  %630 = vmatprep.mubr.f32.mxu0 %v1216_v3 }
  0x2c   : > { %706 = vmatmul.mubr.f32.vlgmr.msra.gmra.mxu1 %v314_v14 }
  0x2e   : > { %632 = vmatmul.mubr.f32.vlgmr.msra.gmra.mxu0 %v314_v14  ;;  %v1220_v14 = vmov 2102212464  }
  0xe4   : > { %v402_v28 = vpop.f32.mrf.mxu1 }
  0xe6   : > { %v320_v30 = vpop.f32.mrf.mxu0  ;;  %v404_v31 = vpop.f32.mrf.mxu1 }
  0xe7   : > { %v321_v32 = vadd.f32 %v320_v30, %v229_v27 }
  0xe8   : > { %v322_v33 = vpop.f32.mrf.mxu0  ;;  %v555_v34 = vpop.f32.mrf.mxu1 }
  0xe9   : > { %v403_v35 = vadd.f32 %v402_v28, %v321_v32  ;;  %v323_v36 = vadd.f32 %v322_v33, %v233_v29 }
  0xea   : > { %v479_v37 = vpop.f32.mrf.mxu0  ;;  %v557_v38 = vpop.f32.mrf.mxu1 }
  0xeb   : > { %v405_v39 = vadd.f32 %v404_v31, %v323_v36  ;;  %v480_v40 = vadd.f32 %v479_v37, %v403_v35 }
  0xec   : > { %v481_v41 = vpop.f32.mrf.mxu0  ;;  %v707_v45 = vpop.f32.mrf.mxu1 }
  0xed   : > { %v556_v42 = vadd.f32 %v555_v34, %v480_v40  ;;  %v482_v43 = vadd.f32 %v481_v41, %v405_v39 }
  0xee   : > { %v633_v44 = vpop.f32.mrf.mxu0  ;;  %v709_v51 = vpop.f32.mrf.mxu1 }
  0xef   : > { %v558_v46 = vadd.f32 %v557_v38, %v482_v43  ;;  %v634_v47 = vadd.f32 %v633_v44, %v556_v42 }
  0xf0   : > { %v635_v48 = vpop.f32.mrf.mxu0 }
  0xf1   : > { %v1310_v49 = vadd.f32 %v707_v45, %v634_v47  ;;  %v636_v50 = vadd.f32 %v635_v48, %v558_v46 }
  0xf3   : > { %v712_v52 = vand.u32 2147483647, %v1310_v49  ;;  %v715_v53 = vand.u32 2139095040, %v1310_v49  ;;  %v1314_v54 = vadd.f32 %v709_v51, %v636_v50  ;;  %vm714_vm0 = vcmp.lt.s32.totalorder %v1310_v49, 0 }
  0xf5   : > { %v716_v55 = vshrl.u32 %v715_v53, 23  ;;  %v719_v56 = vand.u32 8388607, %v712_v52  ;;  %v818_v57 = vand.u32 2139095040, %v1314_v54  ;;  %v815_v59 = vand.u32 2147483647, %v1314_v54 }
  0xf6   : > { %vm1364_vm1 = vcmp.le.f32.partialorder %v712_v52, 0.7853982 }
  0xf7   : > { %v1045_v58 = vadd.s32 4294967169, %v716_v55  ;;  %v819_v60 = vshrl.u32 %v818_v57, 23  ;;  %v720_v62 = vor.u32 8388608, %v719_v56  ;;  %v822_v0 = vand.u32 8388607, %v815_v59 }
  0xf9   : > { %v722_v61 = vadd.s32 1, %v1045_v58  ;;  %v1049_v63 = vadd.s32 4294967169, %v819_v60  ;;  %v1322_v5 = vshll.u32 %v720_v62, 8  ;;  %v823_v9 = vor.u32 8388608, %v822_v0 }
  0xfb   : > { %vm723_vm2 = vcmp.gt.s32.totalorder %v722_v61, 0  ;;  %v825_v2 = vadd.s32 1, %v1049_v63  ;;  %v863_v42 = vshll.u32 %v823_v9, 8 }
  0xfc   : > { %v724_v1 = vsel %vm723_vm2, %v722_v61, 0  ;;  %vm817_vm2 = vcmp.lt.s32.totalorder %v1314_v54, 0 }
  0xfd   : > { %v725_v3 = vshrl.u32 %v724_v1, 5  ;;  %v726_v4 = vand.u32 31, %v724_v1  ;;  %vm826_vm3 = vcmp.gt.s32.totalorder %v825_v2, 0 }
  0xfe   : > { %v827_v28 = vsel %vm826_vm3, %v825_v2, 0  ;;  %vm1374_vm3 = vcmp.le.f32.partialorder %v815_v59, 0.7853982 }
  0xff   : > { %v727_v6 = vsub.s32 32, %v726_v4  ;;  %v729_v8 = vshll.u32 %v1217_v7, %v726_v4  ;;  %v732_v11 = vshll.u32 %v1218_v10, %v726_v4  ;;  %v735_v13 = vshll.u32 %v1219_v12, %v726_v4 }
 0x100   : > { %v738_v15 = vshll.u32 %v1220_v14, %v726_v4  ;;  %v741_v17 = vshll.u32 %v1221_v16, %v726_v4  ;;  %vm744_vm4 = vcmp.lt.s32.totalorder %v725_v3, 1  ;;  %vm746_vm5 = vcmp.lt.s32.totalorder %v725_v3, 3 }
 0x101   : > { %v730_v18 = vshrl.u32 %v1218_v10, %v727_v6  ;;  %v733_v19 = vshrl.u32 %v1219_v12, %v727_v6  ;;  %v736_v20 = vshrl.u32 %v1220_v14, %v727_v6  ;;  %v728_v21 = vshrl.u32 %v1217_v7, %v727_v6 }
 0x102   : > { %v739_v22 = vshrl.u32 %v1221_v16, %v727_v6  ;;  %v742_v24 = vshrl.u32 %v1222_v23, %v727_v6  ;;  %vm747_vm6 = vcmp.lt.s32.totalorder %v725_v3, 4  ;;  %v829_v31 = vand.u32 31, %v827_v28 }
 0x103   : > { %v731_v25 = vor.u32 %v730_v18, %v729_v8  ;;  %v734_v26 = vor.u32 %v733_v19, %v732_v11  ;;  %v737_v27 = vor.u32 %v736_v20, %v735_v13  ;;  %vm745_vm7 = vcmp.lt.s32.totalorder %v725_v3, 2 }
 0x104   : > { %v740_v29 = vor.u32 %v739_v22, %v738_v15  ;;  %v743_v30 = vor.u32 %v742_v24, %v741_v17  ;;  %v830_v39 = vsub.s32 32, %v829_v31  ;;  %v828_v46 = vshrl.u32 %v827_v28, 5 }
 0x105   : > { %v748_v32 = vsel %vm744_vm4, %v728_v21, %v731_v25  ;;  %v749_v33 = vsel %vm747_vm6, %v737_v27, 2102212464  ;;  %v752_v34 = vsel %vm744_vm4, %v731_v25, %v734_v26  ;;  %v756_v35 = vsel %vm744_vm4, %v734_v26, %v737_v27 }
 0x106   : > { %v750_v36 = vsel %vm746_vm5, %v734_v26, %v749_v33  ;;  %v753_v37 = vsel %vm747_vm6, %v740_v29, 920167782  ;;  %v757_v38 = vsel %vm747_vm6, %v743_v30, 1326507024  ;;  %v832_v53 = vshll.u32 %v1217_v7, %v829_v31 }
 0x107   : > { %v754_v40 = vsel %vm746_vm5, %v737_v27, %v753_v37  ;;  %v758_v41 = vsel %vm746_vm5, %v740_v29, %v757_v38  ;;  %v751_v43 = vsel %vm745_vm7, %v748_v32, %v750_v36  ;;  %v833_v55 = vshrl.u32 %v1218_v10, %v830_v39 }
 0x108   : > { %v755_v44 = vsel %vm745_vm7, %v752_v34, %v754_v40  ;;  %v759_v45 = vsel %vm745_vm7, %v756_v35, %v758_v41  ;;  %v835_v56 = vshll.u32 %v1218_v10, %v829_v31  ;;  %v836_v57 = vshrl.u32 %v1219_v12, %v830_v39 }
 0x109   : > { %v1334_v47 = vmul.u32.u64.low %v1322_v5, %v759_v45  ;;  %v1335_v48 = vmul.u32.u64.high %v1322_v5, %v759_v45, %v1334_v47  ;;  %v1338_v50 = vmul.u32.u64.low %v1322_v5, %v755_v44  ;;  %v1339_v51 = vmul.u32.u64.high %v1322_v5, %v755_v44, %v1338_v50 }
 0x10a   : > { %v838_v58 = vshll.u32 %v1219_v12, %v829_v31  ;;  %v839_v60 = vshrl.u32 %v1220_v14, %v830_v39  ;;  %v841_v61 = vshll.u32 %v1220_v14, %v829_v31  ;;  %v842_v62 = vshrl.u32 %v1221_v16, %v830_v39 }
 0x10b   : > { %v834_v63 = vor.u32 %v833_v55, %v832_v53  ;;  %v837_v0 = vor.u32 %v836_v57, %v835_v56  ;;  %v844_v1 = vshll.u32 %v1221_v16, %v829_v31  ;;  %v845_v2 = vshrl.u32 %v1222_v23, %v830_v39 }
 0x10c   : > { %v767_v3 = vmul.u32 %v1322_v5, %v751_v43  ;;  %vm769_vm8 = vc.u32 %v1335_v48, %v1338_v50  ;;  %v770_v4 = vadd.s32 1, %v1339_v51  ;;  %v840_v6 = vor.u32 %v839_v60, %v838_v58 }
 0x10d   : > { %v831_v8 = vshrl.u32 %v1217_v7, %v830_v39  ;;  %v843_v9 = vor.u32 %v842_v62, %v841_v61  ;;  %v846_v10 = vor.u32 %v845_v2, %v844_v1  ;;  %vm847_vm9 = vcmp.lt.s32.totalorder %v828_v46, 1 }
 0x10e   : > { %v771_v11 = vsel %vm769_vm8, %v770_v4, %v1339_v51  ;;  %vm849_vm10 = vcmp.lt.s32.totalorder %v828_v46, 3  ;;  %vm850_vm11 = vcmp.lt.s32.totalorder %v828_v46, 4  ;;  %v855_v12 = vsel %vm847_vm9, %v834_v63, %v837_v0 }
 0x10f   : > { %v772_v13 = vadd.s32 %v771_v11, %v767_v3  ;;  %v852_v14 = vsel %vm850_vm11, %v840_v6, 2102212464  ;;  %v856_v15 = vsel %vm850_vm11, %v843_v9, 920167782  ;;  %v859_v5 = vsel %vm847_vm9, %v837_v0, %v840_v6 }
 0x110   : > { %vm848_vm12 = vcmp.lt.s32.totalorder %v828_v46, 2  ;;  %v851_v16 = vsel %vm847_vm9, %v831_v8, %v834_v63  ;;  %v857_v17 = vsel %vm849_vm10, %v840_v6, %v856_v15  ;;  %v860_v18 = vsel %vm850_vm11, %v846_v10, 1326507024 }
 0x111   : > { %v773_v19 = vadd.s32 536870912, %v772_v13  ;;  %v853_v20 = vsel %vm849_vm10, %v837_v0, %v852_v14  ;;  %v858_v21 = vsel %vm848_vm12, %v855_v12, %v857_v17  ;;  %v861_v7 = vsel %vm849_vm10, %v843_v9, %v860_v18 }
 0x112   : > { %v862_v22 = vsel %vm848_vm12, %v859_v5, %v861_v7  ;;  %v1349_v23 = vmul.u32.u64.low %v863_v42, %v858_v21  ;;  %v1350_v24 = vmul.u32.u64.high %v863_v42, %v858_v21, %v1349_v23  ;;  %v854_v28 = vsel %vm848_vm12, %v851_v16, %v853_v20 }
 0x113   : > { %v774_v25 = vshrl.u32 %v773_v19, 30  ;;  %v1352_v26 = vmul.u32.u64.low %v863_v42, %v862_v22  ;;  %v1353_v27 = vmul.u32.u64.high %v863_v42, %v862_v22, %v1352_v26  ;;  %v870_v32 = vmul.u32 %v863_v42, %v854_v28 }
 0x114   : > { %v873_v30 = vadd.s32 1, %v1350_v24  ;;  %v768_v45 = vadd.s32 %v1338_v50, %v1335_v48  ;;  %vm804_vm7 = vweird.f32 %v1310_v49  ;;  %vm907_vm11 = vweird.f32 %v1314_v54 }
 0x115   : > { %v775_v29 = vshll.u32 %v774_v25, 30  ;;  %vm872_vm13 = vc.u32 %v1353_v27, %v1349_v23  ;;  %v871_v3 = vadd.s32 %v1349_v23, %v1353_v27  ;;  %v798_v5 = vsub.s32 4, %v774_v25 }
 0x116   : > { %v874_v33 = vsel %vm872_vm13, %v873_v30, %v1350_v24 }
 0x117   : > { %v776_v31 = vsub.s32 %v772_v13, %v775_v29  ;;  %v875_v35 = vadd.s32 %v874_v33, %v870_v32  ;;  %v799_v19 = vsel %vm714_vm0, %v798_v5, %v774_v25 }
 0x118   : > { %v801_v7 = vsel %vm1364_vm1, 0, %v799_v19 }
 0x119   : > { %v778_v34 = vsub.s32 0, %v776_v31  ;;  %v876_v37 = vadd.s32 536870912, %v875_v35  ;;  %v805_v24 = vand.u32 3, %v801_v7 }
 0x11b   : > { %v1046_v36 = vmin.u32 %v778_v34, %v776_v31  ;;  %v877_v39 = vshrl.u32 %v876_v37, 30  ;;  %vm810_vm4 = vcmp.eq.s32.totalorder %v805_v24, 2  ;;  %vm807_vm5 = vcmp.eq.s32.totalorder %v805_v24, 0 }
 0x11c   : > { %vm806_vm6 = vcmp.lt.s32.totalorder %v805_v24, 2 }
 0x11d   : > { %v780_v38 = vclz %v1046_v36  ;;  %v878_v41 = vshll.u32 %v877_v39, 30  ;;  %v901_v23 = vsub.s32 4, %v877_v39 }
 0x11f   : > { %v1047_v40 = vadd.s32 4294967294, %v780_v38  ;;  %v879_v43 = vsub.s32 %v875_v35, %v878_v41  ;;  %v902_v59 = vsel %vm817_vm2, %v901_v23, %v877_v39 }
 0x120   : > { %v904_v32 = vsel %vm1374_vm3, 0, %v902_v59 }
 0x121   : > { %vm1048_vm14 = vcmp.lt.s32.totalorder %v1047_v40, 0  ;;  %v881_v47 = vsub.s32 0, %v879_v43  ;;  %v908_v35 = vand.u32 3, %v904_v32 }
 0x122   : > { %v783_v44 = vsel %vm1048_vm14, 0, %v1047_v40 }
 0x123   : > { %v784_v46 = vsub.s32 32, %v783_v44  ;;  %v788_v42 = vsub.s32 4294967266, %v783_v44  ;;  %v785_v51 = vshll.u32 %v776_v31, %v783_v44  ;;  %v1050_v56 = vmin.u32 %v881_v47, %v879_v43 }
 0x124   : > { %vm913_vm8 = vcmp.eq.s32.totalorder %v908_v35, 2  ;;  %vm910_vm9 = vcmp.eq.s32.totalorder %v908_v35, 0  ;;  %vm909_vm10 = vcmp.lt.s32.totalorder %v908_v35, 2 }
 0x125   : > { %v786_v53 = vshrl.u32 %v768_v45, %v784_v46  ;;  %v789_v55 = vadd.s32 127, %v788_v42  ;;  %v883_v60 = vclz %v1050_v56 }
 0x127   : > { %v787_v57 = vor.u32 %v786_v53, %v785_v51  ;;  %v790_v58 = vshll.u32 %v789_v55, 23  ;;  %v1051_v62 = vadd.s32 4294967294, %v883_v60 }
 0x129   : > { %v791_v61 = vor.u32 4788187, %v790_v58  ;;  %v794_v0 = vcvt.s32.f32 %v787_v57  ;;  %vm1052_vm15 = vcmp.lt.s32.totalorder %v1051_v62, 0 }
 0x12a   : > { %v886_v1 = vsel %vm1052_vm15, 0, %v1051_v62 }
 0x12b   : > { %v792_v63 = vand.u32 2147483647, %v791_v61  ;;  %v887_v48 = vsub.s32 32, %v886_v1  ;;  %v891_v50 = vsub.s32 4294967266, %v886_v1  ;;  %v888_v6 = vshll.u32 %v879_v43, %v886_v1 }
 0x12d   : > { %v795_v2 = vmul.f32 %v794_v0, %v792_v63  ;;  %v889_v8 = vshrl.u32 %v871_v3, %v887_v48  ;;  %v892_v9 = vadd.s32 127, %v891_v50 }
 0x12f   : > { %v796_v4 = vxor.u32 2147483648, %v795_v2  ;;  %v890_v12 = vor.u32 %v889_v8, %v888_v6  ;;  %v893_v13 = vshll.u32 %v892_v9, 23 }
 0x131   : > { %v797_v11 = vsel %vm714_vm0, %v796_v4, %v795_v2  ;;  %v894_v15 = vor.u32 4788187, %v893_v13  ;;  %v897_v17 = vcvt.s32.f32 %v890_v12 }
 0x132   : > { %v800_v14 = vsel %vm1364_vm1, %v1310_v49, %v797_v11 }
 0x133   : > { %1130 = vcosq.f32 %v800_v14  ;;  %v895_v16 = vand.u32 2147483647, %v894_v15 }
 0x134   : > { %1132 = vsinq.f32 %v800_v14 }
 0x135   : > { %v898_v18 = vmul.f32 %v897_v17, %v895_v16 }
 0x137   : > { %v899_v52 = vxor.u32 2147483648, %v898_v18 }
 0x139   : > { %v900_v21 = vsel %vm817_vm2, %v899_v52, %v898_v18 }
 0x13a   : > { %v903_v22 = vsel %vm1374_vm3, %v1314_v54, %v900_v21 }
 0x13b   : > { %1134 = vcosq.f32 %v903_v22 }
 0x13c   : > { %1136 = vsinq.f32 %v903_v22 }
 0x140   : > { %v1131_v25 = vpop.eup %1130 }
 0x141   : > { %v1133_v26 = vpop.eup %1132  ;;  %v811_v27 = vxor.u32 2147483648, %v1131_v25 }
 0x142   : > { %v808_v28 = vxor.u32 2147483648, %v1133_v26 }
 0x143   : > { %v812_v29 = vsel %vm810_vm4, %v811_v27, %v1133_v26 }
 0x144   : > { %v809_v30 = vsel %vm807_vm5, %v1131_v25, %v808_v28 }
 0x145   : > { %v813_v31 = vsel %vm806_vm6, %v809_v30, %v812_v29 }
 0x146   : > { %v814_v33 = vsel %vm804_vm7, nan, %v813_v31 }
 0x147   : > { %v918_v34 = vmul.f32 1.4142135, %v814_v33 }
 0x148   : > { %v1135_v36 = vpop.eup %1134 }
 0x149   : > { %920 = vst [vmem:[%s205_s10] sm:$0xff] %v918_v34  ;;  %v1137_v37 = vpop.eup %1136  ;;  %v914_v38 = vxor.u32 2147483648, %v1135_v36 }
 0x14a   : > { %v911_v39 = vxor.u32 2147483648, %v1137_v37 }
 0x14b   : > { %v915_v40 = vsel %vm913_vm8, %v914_v38, %v1137_v37 }
 0x14c   : > { %v912_v49 = vsel %vm910_vm9, %v1135_v36, %v911_v39 }
 0x14d   : > { %v916_v41 = vsel %vm909_vm10, %v912_v49, %v915_v40 }
 0x14e   : > { %v917_v43 = vsel %vm907_vm11, nan, %v916_v41 }
 0x14f   : > { %v919_v44 = vmul.f32 1.4142135, %v917_v43 }
 0x151   : > { %921 = vst [vmem:[%s205_s10 + $0x8] sm:$0xff] %v919_v44 }
 0x152   : > { %1151 = shalt.err (!%p1148_p5)
}
 0x153   : > { %s1152_s30 = scalar_lea.hbm %s937_s23, 256  ;;  %s1156_s6 = scalar_lea.hbm %s1433_s3, 3328 }
 0x154   : > { %p1153_p6 = scmp.ne.s32.totalorder %s937_s23, %s1152_s30  ;;  %p1157_p10 = scmp.lt.s32.totalorder %s937_s23, %s1433_s3 }
 0x155   : > { %p1158_p11 = scmp.lt.s32.totalorder %s1156_s6, %s1152_s30 }
 0x156   : > { %p1154_p7 = pnand %p1153_p6, %p1284_p4 }
 0x157   : > { %p1159_p12 = por %p1158_p11, %p1157_p10 }
 0x158   : > { %p1155_p9 = pneg %p1154_p7 }
 0x15a   : > { %p1160_p13 = pnand %p1159_p12, %p1155_p9 }
 0x15c   : > { %1163 = shalt.err (!%p1160_p13)
}
 0x15d   : > { %1067 = dma.vmem_to_hbm [thread:$0]  (%p1284_p4), %s940_s18, 256, %s937_s23, %s923_s26  }
 0x15e PF: > { %p1073_p0 = scmp.ge.s32.totalorder %s1214_s17, 2  ;;  %s951_s9 = sand.u32 1, %s1194_s12  }
 0x15f   : > { %s952_s10 = scalar_lea.sflag [#allocation3], %s951_s9 }
 0x160   : > { %p1070_p1 = pnand %p1073_p0, %p1291_p8 }
 0x162   : > { %p1071_p2 = pneg %p1070_p1 }
 0x164   : > { %1189 = dma.done.wait (%p1071_p2), %s952_s10, 256  }
 0x165   : > { %1191 = vsyncadd (%p1071_p2), %s952_s10, 4294967040  ;;  %s16_s17 = sadd.s32 1, %s1214_s17   ;;  %s1440_s12 = smov %s1198_s13 }
 0x166   : > { %p13_p3 = scmp.ge.s32.totalorder %s16_s17, 15   ;;  %s1441_s13 = smov %s1202_s14 }
 0x167   : > { %s1442_s14 = smov %s1297_s25  ;;  %s1443_s15 = smov %s1210_s16 }
 0x168   : > { %s1444_s16 = smov %s1446_s20  ;;  %15 = sbr.rel (!%p13_p3) target bundleno = 4 (0x4), region = 73 }
 0x16d   :  { %957 = vsyncpa [#allocation3], 1 }
 0x16e   :  { %959 = vsyncpa [#allocation3 + $0x1], 1 }

</bundles_post_ra>
